<compile_context>
chip_gen: v7x
topology: tpu7x:2x2x1
jax: 0.10.0
libtpu: 0.0.40
codegen_flags: <defaults>
</compile_context>

<pallas_src>
import functools

import jax
import jax.numpy as jnp
from jax.experimental import pallas as pl
from jax.experimental.pallas import tpu as pltpu


def _round_up(x, m):
    return ((x + m - 1) // m) * m


@functools.lru_cache(maxsize=1)
def _tpu_config():
    """Generation-aware tiling / VMEM budgets."""
    vmem_bytes = 64 * 1024 * 1024  # conservative default (v7x: 64 MiB / TC)
    try:
        info = pltpu.get_tpu_info()
        for attr in ("vmem_capacity_bytes", "vmem_bytes", "vmem_size_bytes"):
            v = getattr(info, attr, None)
            if v:
                vmem_bytes = int(v)
                break
    except Exception:
        pass
    big = vmem_bytes >= 96 * 1024 * 1024  # v5e / v6e: 128 MiB VMEM
    mib = 1024 * 1024
    return dict(
        vmem_limit=(64 if big else 40) * mib,
        tm_cap=512,
        tk_cap=2048 if big else 1024,
        tn_cap=1024,
        work_budget=(28 if big else 18) * mib,   # double-buffered working set cap
        fold_budget=(24 if big else 12) * mib,   # folded-bmm per-step VMEM budget
        max_fold=128 if big else 32,
    )


def _work_bytes(tm, tk, tn):
    # bf16 A/F blocks (double-buffered) + f32 out block (double-buffered) + f32 acc.
    return 2 * (tm * tk * 2) + 2 * (tk * tn * 2) + 2 * (tm * tn * 4) + tm * tn * 4


def _pick_tile(d, cap, base):
    """Largest tile (multiple of `base`, <= cap) for padded dim `d`,
    preferring exact divisors of `d` to avoid padding waste."""
    if d <= cap:
        return d
    for t in range(cap, base - 1, -base):
        if d % t == 0:
            return t
    return cap


def _plan(M, K, D, cfg):
    Mp = _round_up(M, 16)           # bf16 sublane packing
    Kp = _round_up(K, 128)
    Dp = _round_up(D, 128)          # lane-dense output
    tm = _pick_tile(Mp, cfg["tm_cap"], 16)
    if _work_bytes(tm, Kp, Dp) <= cfg["work_budget"]:
        # Whole feature slab resident in VMEM -> its block index is constant over
        # the grid, so it's fetched from HBM exactly once.
        tk, tn = Kp, Dp
    else:
        tk = _pick_tile(Kp, cfg["tk_cap"], 128)
        tn = _pick_tile(Dp, cfg["tn_cap"], 128)
    Mp = _round_up(Mp, tm)
    Kp = _round_up(Kp, tk)
    Dp = _round_up(Dp, tn)
    return (Mp, Kp, Dp), (tm, tk, tn)


def _pad_cast(x, shape, dtype):
    """Zero-pad to `shape` and cast to `dtype` (fuses into one pass under jit)."""
    pads = [(0, s - d) for d, s in zip(x.shape, shape)]
    if any(hi for _, hi in pads):
        x = jnp.pad(x, pads)        # zero padding is exact for matmul
    if x.dtype != dtype:
        x = x.astype(dtype)
    return x


def _pick_bb(B, bb_max):
    """Batch fold preferring exact divisors of B; allow <=12.5% padding waste
    only if it buys a strictly larger fold."""
    bb_max = max(1, min(B, bb_max))
    best = 1
    for cand in range(bb_max, 0, -1):
        if B % cand == 0:
            best = cand
            break
    for cand in range(bb_max, best, -1):
        waste = -(-B // cand) * cand - B
        if 8 * waste <= B:
            return cand
    return best


# ---------------------------------------------------------------------------
# Kernels (bf16 operands, f32 accumulation)
# ---------------------------------------------------------------------------

def _mm_kernel(a_ref, f_ref, o_ref, acc_ref):
    # grid = (M_tiles, N_tiles, K_tiles); k (reduction) innermost.
    k = pl.program_id(2)

    @pl.when(k == 0)
    def _():
        acc_ref[...] = jnp.zeros_like(acc_ref)

    acc_ref[...] += jnp.dot(a_ref[...], f_ref[...],
                            preferred_element_type=jnp.float32)

    @pl.when(k == pl.num_programs(2) - 1)
    def _():
        o_ref[...] = acc_ref[...].astype(o_ref.dtype)


def _bmm_tiled_kernel(a_ref, f_ref, o_ref, acc_ref):
    # grid = (B, M_tiles, N_tiles, K_tiles); batch dim squeezed out of the tiles.
    k = pl.program_id(3)

    @pl.when(k == 0)
    def _():
        acc_ref[...] = jnp.zeros_like(acc_ref)

    acc_ref[...] += jnp.dot(a_ref[...], f_ref[...],
                            preferred_element_type=jnp.float32)

    @pl.when(k == pl.num_programs(3) - 1)
    def _():
        o_ref[...] = acc_ref[...].astype(o_ref.dtype)


def _bmm_folded_kernel(a_ref, f_ref, o_ref):
    # a_ref: (bb, M, K), f_ref: (bb, K, D), o_ref: (bb, M, D)
    o_ref[...] = jnp.einsum(
        "bmk,bkd->bmd", a_ref[...], f_ref[...],
        preferred_element_type=jnp.float32,
    ).astype(o_ref.dtype)


# ---------------------------------------------------------------------------
# Wrappers
# ---------------------------------------------------------------------------

def _matmul_2d(A, features, tiles=None):
    """Dense A @ features with an M/N/K-tiled Pallas kernel (spmm path)."""
    cfg = _tpu_config()
    M, K = A.shape
    D = features.shape[-1]
    if tiles is None:
        (Mp, Kp, Dp), (tm, tk, tn) = _plan(M, K, D, cfg)
    else:  # testing override
        tm, tk, tn = tiles
        Mp, Kp, Dp = _round_up(M, tm), _round_up(K, tk), _round_up(D, tn)
    Ap = _pad_cast(A, (Mp, Kp), jnp.bfloat16)
    Fp = _pad_cast(features, (Kp, Dp), jnp.bfloat16)
    out_itemsize = jnp.dtype(features.dtype).itemsize
    out = pl.pallas_call(
        _mm_kernel,
        out_shape=jax.ShapeDtypeStruct((Mp, Dp), features.dtype),
        grid_spec=pltpu.PrefetchScalarGridSpec(
            num_scalar_prefetch=0,
            grid=(Mp // tm, Dp // tn, Kp // tk),
            in_specs=[
                pl.BlockSpec((tm, tk), lambda i, j, k: (i, k)),
                pl.BlockSpec((tk, tn), lambda i, j, k: (k, j)),
            ],
            out_specs=pl.BlockSpec((tm, tn), lambda i, j, k: (i, j)),
            scratch_shapes=[pltpu.VMEM((tm, tn), jnp.float32)],
        ),
        compiler_params=pltpu.CompilerParams(
            dimension_semantics=("parallel", "parallel", "arbitrary"),
            vmem_limit_bytes=cfg["vmem_limit"],
        ),
        cost_estimate=pl.CostEstimate(
            flops=2 * M * K * D,
            transcendentals=0,
            bytes_accessed=(M * K + K * D) * 2 + M * D * out_itemsize,
        ),
    )(Ap, Fp)
    if (Mp, Dp) != (M, D):
        out = out[:M, :D]
    return out


def _bmm(A, features, force_tiled=False, tiles=None):
    """Batched A @ features (bmm path)."""
    cfg = _tpu_config()
    B, M, K = A.shape
    D = features.shape[-1]
    out_itemsize = jnp.dtype(features.dtype).itemsize
    cost = pl.CostEstimate(
        flops=2 * B * M * K * D,
        transcendentals=0,
        bytes_accessed=B * ((M * K + K * D) * 2 + M * D * out_itemsize),
    )

    Mp = _round_up(M, 16)
    Kp = _round_up(K, 128)
    Dp = _round_up(D, 128)
    per_batch_bytes = 2 * (Mp * Kp * 2 + Kp * Dp * 2 + Mp * Dp * 4)

    if per_batch_bytes <= cfg["fold_budget"] and not force_tiled:
        # Small per-batch problems: fold several batches into each grid step.
        bb_max = min(B, cfg["max_fold"],
                     max(1, cfg["fold_budget"] // per_batch_bytes))
        if B >= 2:
            bb_max = min(bb_max, (B + 1) // 2)  # >=2 grid steps -> both v7x TCs fed
        bb = _pick_bb(B, bb_max)
        Bp = _round_up(B, bb)
        Ap = _pad_cast(A, (Bp, Mp, Kp), jnp.bfloat16)
        Fp = _pad_cast(features, (Bp, Kp, Dp), jnp.bfloat16)
        out = pl.pallas_call(
            _bmm_folded_kernel,
            out_shape=jax.ShapeDtypeStruct((Bp, Mp, Dp), features.dtype),
            grid_spec=pltpu.PrefetchScalarGridSpec(
                num_scalar_prefetch=0,
                grid=(Bp // bb,),
                in_specs=[
                    pl.BlockSpec((bb, Mp, Kp), lambda b: (b, 0, 0)),
                    pl.BlockSpec((bb, Kp, Dp), lambda b: (b, 0, 0)),
                ],
                out_specs=pl.BlockSpec((bb, Mp, Dp), lambda b: (b, 0, 0)),
            ),
            compiler_params=pltpu.CompilerParams(
                dimension_semantics=("parallel",),
                vmem_limit_bytes=cfg["vmem_limit"],
            ),
            cost_estimate=cost,
        )(Ap, Fp)
        if (Bp, Mp, Dp) != (B, M, D):
            out = out[:B, :M, :D]
        return out

    # Large per-batch problems: tile M/N/K per batch with an f32 accumulator.
    if tiles is None:
        (Mp, Kp, Dp), (tm, tk, tn) = _plan(M, K, D, cfg)
    else:  # testing override
        tm, tk, tn = tiles
        Mp, Kp, Dp = _round_up(M, tm), _round_up(K, tk), _round_up(D, tn)
    Ap = _pad_cast(A, (B, Mp, Kp), jnp.bfloat16)
    Fp = _pad_cast(features, (B, Kp, Dp), jnp.bfloat16)
    out = pl.pallas_call(
        _bmm_tiled_kernel,
        out_shape=jax.ShapeDtypeStruct((B, Mp, Dp), features.dtype),
        grid_spec=pltpu.PrefetchScalarGridSpec(
            num_scalar_prefetch=0,
            grid=(B, Mp // tm, Dp // tn, Kp // tk),
            in_specs=[
                pl.BlockSpec((pl.Squeezed(), tm, tk), lambda b, i, j, k: (b, i, k)),
                pl.BlockSpec((pl.Squeezed(), tk, tn), lambda b, i, j, k: (b, k, j)),
            ],
            out_specs=pl.BlockSpec((pl.Squeezed(), tm, tn),
                                   lambda b, i, j, k: (b, i, j)),
            scratch_shapes=[pltpu.VMEM((tm, tn), jnp.float32)],
        ),
        compiler_params=pltpu.CompilerParams(
            dimension_semantics=("parallel", "parallel", "parallel", "arbitrary"),
            vmem_limit_bytes=cfg["vmem_limit"],
        ),
        cost_estimate=cost,
    )(Ap, Fp)
    if (Mp, Dp) != (M, D):
        out = out[:, :M, :D]
    return out


def mean_aggregator(features, A):
    """Pallas equivalent of MeanAggregator.forward(features, A)."""
    if features.ndim == 2:
        # torch.spmm(A, features) treated densely.
        # TODO(synk): genuinely sparse A (CSR) has no clean Pallas sparse path; dense A @ F here.
        return _matmul_2d(A, features)
    elif features.ndim == 3:
        return _bmm(A, features)
    else:
        raise RuntimeError("the dimension of features should be 2 or 3")


if __name__ == "__main__":
    key = jax.random.PRNGKey(0)
    keys = jax.random.split(key, 12)

    agg = jax.jit(mean_aggregator)

    def row_norm(a):
        return a / jnp.sum(a, axis=-1, keepdims=True)

    def check(out, A, F, name):
        ref_f32 = jnp.matmul(A, F)
        ref_bf16 = jnp.matmul(A.astype(jnp.bfloat16), F.astype(jnp.bfloat16),
                              preferred_element_type=jnp.float32)
        assert out.shape == ref_f32.shape, name
        # tight check vs a reference with the same bf16-operand / f32-accumulate numerics
        assert jnp.allclose(out, ref_bf16, atol=1e-3, rtol=1e-3), name
        # looser sanity check vs the full-f32 PyTorch-style reference
        assert jnp.allclose(out, ref_f32, atol=3e-2, rtol=5e-2), name

    # 1) 3-D (bmm) folded path: batch=2, nodes=8, hidden=32
    B, N, D = 2, 8, 32
    A3 = row_norm(jax.random.uniform(keys[0], (B, N, N), dtype=jnp.float32))
    F3 = jax.random.normal(keys[1], (B, N, D), dtype=jnp.float32)
    out3 = jax.block_until_ready(agg(F3, A3))
    check(out3, A3, F3, "bmm-small")

    # 2) 2-D (spmm) path: nodes=8, hidden=32
    A2 = row_norm(jax.random.uniform(keys[2], (N, N), dtype=jnp.float32))
    F2 = jax.random.normal(keys[3], (N, D), dtype=jnp.float32)
    out2 = jax.block_until_ready(agg(F2, A2))
    check(out2, A2, F2, "spmm-small")

    # 3) misaligned 2-D case (exercises fused pad+cast and output slice)
    N2, D2 = 200, 72
    A2b = row_norm(jax.random.uniform(keys[4], (N2, N2), dtype=jnp.float32))
    F2b = jax.random.normal(keys[5], (N2, D2), dtype=jnp.float32)
    out2b = jax.block_until_ready(agg(F2b, A2b))
    check(out2b, A2b, F2b, "spmm-misaligned")

    # 4) misaligned batch count on the folded path (bb selection / batch handling)
    B4, N4, D4 = 3, 24, 40
    A4 = row_norm(jax.random.uniform(keys[6], (B4, N4, N4), dtype=jnp.float32))
    F4 = jax.random.normal(keys[7], (B4, N4, D4), dtype=jnp.float32)
    out4 = jax.block_until_ready(agg(F4, A4))
    check(out4, A4, F4, "bmm-oddbatch")

    # 5) forced K-accumulation on the 2-D tiled kernel (small tiles for test speed)
    M5, K5, D5 = 256, 384, 256
    A5 = row_norm(jax.random.uniform(keys[8], (M5, K5), dtype=jnp.float32))
    F5 = jax.random.normal(keys[9], (K5, D5), dtype=jnp.float32)
    out5 = jax.block_until_ready(_matmul_2d(A5, F5, tiles=(128, 128, 128)))
    check(out5, A5, F5, "spmm-tiled")

    # 6) forced tiled bmm kernel (squeezed batch + K accumulation)
    B6 = 2
    A6 = row_norm(jax.random.uniform(keys[10], (B6, M5, K5), dtype=jnp.float32))
    F6 = jax.random.normal(keys[11], (B6, K5, D5), dtype=jnp.float32)
    out6 = jax.block_until_ready(_bmm(A6, F6, force_tiled=True, tiles=(128, 128, 128)))
    check(out6, A6, F6, "bmm-tiled")

    print("KERNEL_OK")
</pallas_src>

<mosaic_0001>
module attributes {stable_mosaic.version = 11 : i64} {
  func.func @_bmm_folded_kernel(%arg0: i32, %arg1: memref<1x16x128xbf16, #tpu.memory_space<vmem>>, %arg2: memref<1x128x128xbf16, #tpu.memory_space<vmem>>, %arg3: memref<1x16x128xf32, #tpu.memory_space<vmem>>) attributes {dimension_semantics = [#tpu.dimension_semantics<parallel>], iteration_bounds = array<i64: 2>, scalar_prefetch = 0 : i64, scratch_operands = 0 : i64, tpu.core_type = #tpu.core_type<tc>, window_params = [{transform_indices = @transform_0, window_bounds = array<i64: 1, 16, 128>}, {transform_indices = @transform_1, window_bounds = array<i64: 1, 128, 128>}, {transform_indices = @transform_2, window_bounds = array<i64: 1, 16, 128>}]} {
    %c0 = arith.constant 0 : index
    %c0_0 = arith.constant 0 : index
    %c0_1 = arith.constant 0 : index
    %0 = vector.load %arg1[%c0, %c0_0, %c0_1] : memref<1x16x128xbf16, #tpu.memory_space<vmem>>, vector<1x16x128xbf16>
    %c0_2 = arith.constant 0 : index
    %c0_3 = arith.constant 0 : index
    %c0_4 = arith.constant 0 : index
    %1 = vector.load %arg2[%c0_2, %c0_3, %c0_4] : memref<1x128x128xbf16, #tpu.memory_space<vmem>>, vector<1x128x128xbf16>
    "tpu.trace_start"() <{level = 10 : i32, message = "bmk,bkd->bmd"}> : () -> ()
    %cst = arith.constant dense<0.000000e+00> : vector<1x16x128xf32>
    %2 = tpu.matmul %0, %1, %cst {dimension_numbers = #tpu.dot_dimension_numbers<[2], [1], [1], [2], [0, 0, 0, 1, 1, 2], [0], [0]>} : vector<1x16x128xbf16>, vector<1x128x128xbf16>, vector<1x16x128xf32> -> vector<1x16x128xf32>
    "tpu.trace_stop"() : () -> ()
    %c0_5 = arith.constant 0 : index
    %c0_6 = arith.constant 0 : index
    %c0_7 = arith.constant 0 : index
    %3 = vector.load %arg3[%c0_5, %c0_6, %c0_7] : memref<1x16x128xf32, #tpu.memory_space<vmem>>, vector<1x16x128xf32>
    tpu.vector_store %arg3[%c0_5, %c0_6, %c0_7], %2 {strides = array<i32>} : memref<1x16x128xf32, #tpu.memory_space<vmem>>, vector<1x16x128xf32>,
    return
  }
  func.func @transform_0(%arg0: i32) -> (i32, i32, i32) {
    %c0_i32 = arith.constant 0 : i32
    %c0_i32_0 = arith.constant 0 : i32
    %c0_i32_1 = arith.constant 0 : i32
    return %arg0, %c0_i32, %c0_i32_0 : i32, i32, i32
  }
  func.func @transform_1(%arg0: i32) -> (i32, i32, i32) {
    %c0_i32 = arith.constant 0 : i32
    %c0_i32_0 = arith.constant 0 : i32
    %c0_i32_1 = arith.constant 0 : i32
    return %arg0, %c0_i32, %c0_i32_0 : i32, i32, i32
  }
  func.func @transform_2(%arg0: i32) -> (i32, i32, i32) {
    %c0_i32 = arith.constant 0 : i32
    %c0_i32_0 = arith.constant 0 : i32
    %c0_i32_1 = arith.constant 0 : i32
    return %arg0, %c0_i32, %c0_i32_0 : i32, i32, i32
  }
}

</mosaic_0001>

<bundles_post_ra>
// kernel: mean_aggregator.1
= control target key start
LH: loop header
LB: loop body
LE: loop exit
PB: predicated region body
PF: predicated region fallthrough
CT: control target
= control target key end

     0   :  { %s445_s9 = smov 0   ;;  %s470_s0 = inlined_call_operand.vmem [shape: bf16[2,16,128], index: 0, kind: input, shape index: {}]   ;;  %s471_s1 = inlined_call_operand.vmem [shape: bf16[2,128,128], index: 1, kind: input, shape index: {}]   ;;  %s472_s2 = inlined_call_operand.vmem [shape: f32[2,16,128], index: 2, kind: output, shape index: {}]  }
   0x1 LB: > { %s347_s10 = sadd.s32 4294967295, %s426_s9   ;;  %p351_p0 = scmp.ge.s32.totalorder %s426_s9, 1  ;;  %s426_s9 = sphi %s445_s9, %s12_s9  }
   0x2   : > { %p122_p1 = scmp.lt.s32.totalorder %s426_s9, 3 }
   0x4   : > { %p123_p2 = pnand %p351_p0, %p122_p1 }
   0x5   : > { %p149_p3 = scmp.lt.s32.totalorder (!%p123_p2), %s347_s10, 1  ;;  %v428_v0 = vmov (!%p123_p2), 0.0   ;;  %vm429_vm0 = vmmov (!%p123_p2), 0  }
   0x6   : > { %126 = sbr.rel (%p123_p2) target bundleno = 263 (0x107), region = 28  ;;  %381 = vmatprep.subr.bf16.mxu0 (!%p123_p2), %v428_v0  ;;  %397 = vmatprep.mubr.msk.bf16.mxu0 (!%p123_p2), %vm429_vm0, %v428_v0 }
   0xd   : > { %s474_s10 = smov (!%p149_p3, %s347_s10), 1 }
   0xe   : > { %s370_s11 = sshll.u32 %s474_s10, 6  ;;  %s369_s15 = sshll.u32 %s474_s10, 3 }
   0xf   : > { %s158_s14 = scalar_lea.vmem %s471_s1, %s370_s11  ;;  %s153_s18 = scalar_lea.vmem %s470_s0, %s369_s15 }
  0x10   : > { %v411_v1 = vld [vmem:[%s158_s14] sm:$0xff]   ;;  %v412_v2 = vld [vmem:[%s158_s14 + $0x8] sm:$0xff]   ;;  %v413_v3 = vld [vmem:[%s158_s14 + $0x10] sm:$0xff]   ;;  %s371_s19 = sshll.u32 %s474_s10, 4 }
  0x11   : > { %382 = vmatpush3.bf16.msra.mxu0 %v411_v1  ;;  %v414_v4 = vld [vmem:[%s158_s14 + $0x18] sm:$0xff]   ;;  %v415_v5 = vld [vmem:[%s158_s14 + $0x20] sm:$0xff]   ;;  %v416_v6 = vld [vmem:[%s158_s14 + $0x28] sm:$0xff]   ;;  %s163_s22 = scalar_lea.vmem %s472_s2, %s371_s19 }
  0x12   : > { %383 = vmatprep.subr.bf16.mxu0 %v428_v0  ;;  %v417_v7 = vld [vmem:[%s158_s14 + $0x30] sm:$0xff]   ;;  %v418_v8 = vld [vmem:[%s158_s14 + $0x38] sm:$0xff]   ;;  %v419_v9 = vld [vmem:[%s153_s18] sm:$0xff]  }
  0x15   : > { %384 = vmatpush3.bf16.msra.mxu0 %v412_v2 }
  0x16   : > { %385 = vmatprep.subr.bf16.mxu0 %v428_v0 }
  0x19   : > { %386 = vmatpush3.bf16.msra.mxu0 %v413_v3 }
  0x1a   : > { %387 = vmatprep.subr.bf16.mxu0 %v428_v0 }
  0x1d   : > { %388 = vmatpush3.bf16.msra.mxu0 %v414_v4 }
  0x1e   : > { %389 = vmatprep.subr.bf16.mxu0 %v428_v0 }
  0x21   : > { %390 = vmatpush3.bf16.msra.mxu0 %v415_v5 }
  0x22   : > { %391 = vmatprep.subr.bf16.mxu0 %v428_v0 }
  0x25   : > { %392 = vmatpush3.bf16.msra.mxu0 %v416_v6 }
  0x26   : > { %393 = vmatprep.subr.bf16.mxu0 %v428_v0 }
  0x29   : > { %394 = vmatpush3.bf16.msra.mxu0 %v417_v7 }
  0x2a   : > { %395 = vmatprep.subr.bf16.mxu0 %v428_v0 }
  0x2d   : > { %396 = vmatpush3.bf16.msra.mxu0 %v418_v8 }
  0x30   : > { %398 = vmatmul.mubr.bf16.vlgmr.msra.gmra.mrb[0].mxu0 %v419_v9 }
 0x103   : > { %v271_v10 = vpop.f32.mrb[0].mxu0 }
 0x104   : > { %278 = vst [vmem:[%s163_s22] sm:$0xff] %v271_v10  ;;  %v399_v11 = vpop.f32.mrb[1].mxu0 }
 0x105   : > { %v274_v12 = vpop.f32.mrb[2].mxu0 }
 0x106   : > { %279 = vst [vmem:[%s163_s22 + $0x8] sm:$0xff] %v274_v12  ;;  %v400_v13 = vpop.f32.mrb[3].mxu0 }
 0x107 PF: > { %s12_s9 = sadd.s32 1, %s426_s9  }
 0x108   : > { %p9_p4 = scmp.ge.s32.totalorder %s12_s9, 4  }
 0x10a   :  { %11 = sbr.rel (!%p9_p4) target bundleno = 1 (0x1), region = 61 }

</bundles_post_ra>
